<compile_context>
chip_gen: v7x
topology: tpu7x:2x2x1
jax: 0.10.0
libtpu: 0.0.40
codegen_flags: <defaults>
</compile_context>

<pallas_src>
import jax
import jax.numpy as jnp
from jax.experimental import pallas as pl
from jax.experimental.pallas import tpu as pltpu


# --------------------------- chip dispatch (host) ----------------------------
_USE_MXU_K_CONTRACT = None


def _use_mxu_for_k_contract():
    """True on TPU v7x (VALU co-critical there); False on v5e/v6e (HBM-bound)."""
    global _USE_MXU_K_CONTRACT
    if _USE_MXU_K_CONTRACT is None:
        try:
            kind = jax.devices()[0].device_kind.lower()
        except Exception:
            kind = ""
        _USE_MXU_K_CONTRACT = ("v7" in kind) or ("tpu7" in kind)
    return _USE_MXU_K_CONTRACT


# ----------------------------- Pallas kernel --------------------------------
def _make_embed_kernel(use_mxu_k_contract):
    def kernel(x_ref, scale_ref, shift_ref, w1_ref, w2_ref, o_ref):
        # x_ref     : (1, C, tn)    raw input columns (channel-major)
        # scale_ref : (C, tn)       fused BatchNorm scale (per (c, j), const over t)
        # shift_ref : (C, tn)       fused BatchNorm shift
        # w1_ref    : (64, C)       conv1 weight (out, in)
        # w2_ref    : (dim1, 64)    conv2 weight (out, in)
        # o_ref     : (1, dim1, tn)
        x = x_ref[0] * scale_ref[...] + shift_ref[...]      # fused BN, (C, tn)
        w1 = w1_ref[...]                                     # (64, C)

        if use_mxu_k_contract:
            # v7x: put the tiny K=C contraction on the MXU (it has slack);
            # keeps the VALU slot free on the high-bandwidth chip.
            h = jnp.dot(w1, x, preferred_element_type=jnp.float32)       # (64, tn)
        else:
            # v5e/v6e: C rank-1 broadcast-FMAs on the VPU; kernel is HBM-bound
            # either way, and this keeps the MXU pipeline for the dense matmul.
            c = x.shape[0]
            h = w1[:, 0:1] * x[0:1, :]
            for ci in range(1, c):
                h = h + w1[:, ci:ci + 1] * x[ci:ci + 1, :]

        h = jnp.maximum(h, 0.0)                              # ReLU after cnn1x1(dim, 64)
        y = jnp.dot(w2_ref[...], h, preferred_element_type=jnp.float32)  # (dim1, tn), MXU
        o_ref[0] = jnp.maximum(y, 0.0).astype(o_ref.dtype)   # ReLU after cnn1x1(64, dim1)

    return kernel


def _embed_pallas(x3d, scale2d, shift2d, w1, w2, *, tn_max=2048):
    """x3d: (bs, C, N) f32, scale2d/shift2d: (C, N), w1: (64, C), w2: (dim1, 64)
    -> (bs, dim1, N) f32."""
    bs, c, n = x3d.shape
    hid = w1.shape[0]
    dim1 = w2.shape[0]

    # Column tile: full N when small (always a legal block), else a lane-dense
    # multiple of 128; ragged tail handled by Pallas boundary masking (no pad).
    tn = n if n <= tn_max else tn_max
    n_tiles = pl.cdiv(n, tn)

    # v7x megacore: guarantee >= 2 parallel grid blocks so both TensorCores
    # get work even when bs == 1 and N fits in one tile.
    if bs * n_tiles < 2 and n > 128:
        tn = min(tn, ((pl.cdiv(n, 2) + 127) // 128) * 128)
        n_tiles = pl.cdiv(n, tn)

    # Batch innermost: scale/shift (index (0, i)) and w1/w2 (constant index)
    # keep the same block index across consecutive steps -> no re-DMA.
    grid = (n_tiles, bs)

    kernel = _make_embed_kernel(_use_mxu_for_k_contract())

    return pl.pallas_call(
        kernel,
        out_shape=jax.ShapeDtypeStruct((bs, dim1, n), jnp.float32),
        grid_spec=pltpu.PrefetchScalarGridSpec(
            num_scalar_prefetch=0,
            grid=grid,
            in_specs=[
                pl.BlockSpec((1, c, tn), lambda i, b: (b, 0, i)),
                pl.BlockSpec((c, tn), lambda i, b: (0, i)),
                pl.BlockSpec((c, tn), lambda i, b: (0, i)),
                pl.BlockSpec((hid, c), lambda i, b: (0, 0)),
                pl.BlockSpec((dim1, hid), lambda i, b: (0, 0)),
            ],
            out_specs=pl.BlockSpec((1, dim1, tn), lambda i, b: (b, 0, i)),
        ),
        compiler_params=pltpu.CompilerParams(
            dimension_semantics=("parallel", "parallel")),
    )(x3d, scale2d, shift2d, w1, w2)


# ------------------------------ Module wrapper -------------------------------
class EmbedPallas:
    """JAX/Pallas equivalent of `embed(dim, dim1, norm=True, bias=False)`."""

    def __init__(self, dim=3, dim1=128, norm=True, bias=False, key=None):
        assert not bias, "embed() is constructed with bias=False"
        self.dim, self.dim1, self.norm = dim, dim1, norm
        key = jax.random.PRNGKey(0) if key is None else key
        k1, k2 = jax.random.split(key)
        # PyTorch Conv2d default init: U(-b, b), b = 1/sqrt(fan_in) (k=1x1);
        # stored in (out, in) layout — exactly the squeezed Conv2d weight.
        b1 = 1.0 / jnp.sqrt(jnp.asarray(dim, jnp.float32))
        b2 = 1.0 / jnp.sqrt(jnp.asarray(64, jnp.float32))
        self.w1 = jax.random.uniform(k1, (64, dim), jnp.float32, -b1, b1)
        self.w2 = jax.random.uniform(k2, (dim1, 64), jnp.float32, -b2, b2)
        # BatchNorm1d(dim*25) affine params at fresh init
        self.bn_gamma = jnp.ones((dim * 25,), jnp.float32)
        self.bn_beta = jnp.zeros((dim * 25,), jnp.float32)
        self.bn_eps = 1e-5
        # Jit the whole forward: BN stats + param expansion fuse around the
        # single pallas_call (biggest absolute win at the shipped tiny shapes).
        self._jit_forward = jax.jit(self._forward)

    def _forward(self, x):
        # x: (bs, C, J, T) float32, NCHW (J = num_joints = 25)
        bs, c, j, t = x.shape
        assert c == self.dim and j == 25
        x = x.astype(jnp.float32)

        if self.norm:
            # norm_data: view (bs, C*J, T); BatchNorm1d over channel C*J with
            # training-mode batch statistics (biased variance), affine = id.
            # Only the tiny reduction runs in plain JAX; the scale/shift
            # application is fused into the Pallas kernel prologue.
            # TODO(synk): no eval-mode running-stats path (PyTorch .eval() differs).
            xv = x.reshape(bs, c * j, t)
            mean = jnp.mean(xv, axis=(0, 2))                            # (C*J,)
            var = jnp.mean(jnp.square(xv - mean[None, :, None]), axis=(0, 2))
            scale_cj = self.bn_gamma / jnp.sqrt(var + self.bn_eps)      # (C*J,)
            shift_cj = self.bn_beta - mean * scale_cj
        else:
            scale_cj = jnp.ones((c * j,), jnp.float32)
            shift_cj = jnp.zeros((c * j,), jnp.float32)

        # Expand per-(c,j) params to (C, J*T) (constant over t) — tiny arrays,
        # fused by XLA under jit; the kernel streams them once per column tile.
        scale2d = jnp.broadcast_to(scale_cj.reshape(c, j, 1), (c, j, t)).reshape(c, j * t)
        shift2d = jnp.broadcast_to(shift_cj.reshape(c, j, 1), (c, j, t)).reshape(c, j * t)

        # Channel-major, no transposes: NCHW is already (bs, C, J*T) in memory.
        x3d = x.reshape(bs, c, j * t)
        y3d = _embed_pallas(x3d, scale2d, shift2d, self.w1, self.w2)    # (bs, dim1, J*T)
        return y3d.reshape(bs, self.dim1, j, t)                         # NCHW

    def __call__(self, x):
        return self._jit_forward(x)


# ---------------------------------- main -------------------------------------
if __name__ == "__main__":
    key = jax.random.PRNGKey(0)
    kx, kp = jax.random.split(key)

    bs, dim, num_joints, step = 2, 3, 25, 8   # small shapes; J=25 required by norm_data
    x = jax.random.normal(kx, (bs, dim, num_joints, step), jnp.float32)

    model = EmbedPallas(dim=dim, dim1=128, norm=True, bias=False, key=kp)
    out = model(x)
    out = jax.block_until_ready(out)

    assert out.shape == (bs, 128, num_joints, step), out.shape
    assert bool(jnp.all(out >= 0.0))          # final ReLU

    # Pure-JAX reference (training-mode BatchNorm, biased variance).
    xr = x.reshape(bs, dim * num_joints, step)
    mean = jnp.mean(xr, axis=(0, 2), keepdims=True)
    var = jnp.mean(jnp.square(xr - mean), axis=(0, 2), keepdims=True)
    xn = ((xr - mean) / jnp.sqrt(var + model.bn_eps)).reshape(bs, dim, num_joints, step)
    h_ref = jnp.maximum(
        jnp.einsum('oc,bcjt->bojt', model.w1, xn, precision=jax.lax.Precision.HIGHEST), 0.0)
    ref = jnp.maximum(
        jnp.einsum('po,bojt->bpjt', model.w2, h_ref, precision=jax.lax.Precision.HIGHEST), 0.0)
    assert bool(jnp.allclose(out, ref, rtol=1e-2, atol=1e-2)), float(jnp.max(jnp.abs(out - ref)))

    print("KERNEL_OK")
</pallas_src>

<mosaic_0001>
module attributes {stable_mosaic.version = 11 : i64} {
  func.func @kernel(%arg0: i32, %arg1: i32, %arg2: memref<1x3x200xf32, #tpu.memory_space<vmem>>, %arg3: memref<3x200xf32, #tpu.memory_space<vmem>>, %arg4: memref<3x200xf32, #tpu.memory_space<vmem>>, %arg5: memref<64x3xf32, #tpu.memory_space<vmem>>, %arg6: memref<128x64xf32, #tpu.memory_space<vmem>>, %arg7: memref<1x128x200xf32, #tpu.memory_space<vmem>>) attributes {dimension_semantics = [#tpu.dimension_semantics<parallel>, #tpu.dimension_semantics<parallel>], iteration_bounds = array<i64: 1, 2>, scalar_prefetch = 0 : i64, scratch_operands = 0 : i64, tpu.core_type = #tpu.core_type<tc>, window_params = [{transform_indices = @transform_0, window_bounds = array<i64: 1, 3, 200>}, {transform_indices = @transform_1, window_bounds = array<i64: 3, 200>}, {transform_indices = @transform_2, window_bounds = array<i64: 3, 200>}, {pipeline_mode = #tpu.pipeline_mode<synchronous>, transform_indices = @transform_3, window_bounds = array<i64: 64, 3>}, {pipeline_mode = #tpu.pipeline_mode<synchronous>, transform_indices = @transform_4, window_bounds = array<i64: 128, 64>}, {transform_indices = @transform_5, window_bounds = array<i64: 1, 128, 200>}]} {
    %c0 = arith.constant 0 : index
    %c0_0 = arith.constant 0 : index
    %c0_1 = arith.constant 0 : index
    %0 = vector.load %arg2[%c0, %c0_0, %c0_1] : memref<1x3x200xf32, #tpu.memory_space<vmem>>, vector<1x3x200xf32>
    %1 = vector.shape_cast %0 : vector<1x3x200xf32> to vector<3x200xf32>
    %c0_2 = arith.constant 0 : index
    %c0_3 = arith.constant 0 : index
    %2 = vector.load %arg3[%c0_2, %c0_3] : memref<3x200xf32, #tpu.memory_space<vmem>>, vector<3x200xf32>
    %3 = arith.mulf %1, %2 : vector<3x200xf32>
    %c0_4 = arith.constant 0 : index
    %c0_5 = arith.constant 0 : index
    %4 = vector.load %arg4[%c0_4, %c0_5] : memref<3x200xf32, #tpu.memory_space<vmem>>, vector<3x200xf32>
    %5 = arith.addf %3, %4 : vector<3x200xf32>
    %c0_6 = arith.constant 0 : index
    %c0_7 = arith.constant 0 : index
    %6 = vector.load %arg5[%c0_6, %c0_7] : memref<64x3xf32, #tpu.memory_space<vmem>>, vector<64x3xf32>
    %7 = vector.extract_strided_slice %6 {offsets = [0, 0], sizes = [64, 1], strides = [1, 1]} : vector<64x3xf32> to vector<64x1xf32>
    %8 = vector.extract_strided_slice %5 {offsets = [0, 0], sizes = [1, 200], strides = [1, 1]} : vector<3x200xf32> to vector<1x200xf32>
    %9 = vector.broadcast %7 : vector<64x1xf32> to vector<64x200xf32>
    %10 = vector.broadcast %8 : vector<1x200xf32> to vector<64x200xf32>
    %11 = arith.mulf %9, %10 : vector<64x200xf32>
    %12 = vector.extract_strided_slice %6 {offsets = [0, 1], sizes = [64, 1], strides = [1, 1]} : vector<64x3xf32> to vector<64x1xf32>
    %13 = vector.extract_strided_slice %5 {offsets = [1, 0], sizes = [1, 200], strides = [1, 1]} : vector<3x200xf32> to vector<1x200xf32>
    %14 = vector.broadcast %12 : vector<64x1xf32> to vector<64x200xf32>
    %15 = vector.broadcast %13 : vector<1x200xf32> to vector<64x200xf32>
    %16 = arith.mulf %14, %15 : vector<64x200xf32>
    %17 = arith.addf %11, %16 : vector<64x200xf32>
    %18 = vector.extract_strided_slice %6 {offsets = [0, 2], sizes = [64, 1], strides = [1, 1]} : vector<64x3xf32> to vector<64x1xf32>
    %19 = vector.extract_strided_slice %5 {offsets = [2, 0], sizes = [1, 200], strides = [1, 1]} : vector<3x200xf32> to vector<1x200xf32>
    %20 = vector.broadcast %18 : vector<64x1xf32> to vector<64x200xf32>
    %21 = vector.broadcast %19 : vector<1x200xf32> to vector<64x200xf32>
    %22 = arith.mulf %20, %21 : vector<64x200xf32>
    %23 = arith.addf %17, %22 : vector<64x200xf32>
    %cst = arith.constant 0.000000e+00 : f32
    %24 = vector.broadcast %cst : f32 to vector<64x200xf32>
    %25 = arith.maximumf %23, %24 : vector<64x200xf32>
    %c0_8 = arith.constant 0 : index
    %c0_9 = arith.constant 0 : index
    %26 = vector.load %arg6[%c0_8, %c0_9] : memref<128x64xf32, #tpu.memory_space<vmem>>, vector<128x64xf32>
    %cst_10 = arith.constant dense<0.000000e+00> : vector<128x200xf32>
    %27 = tpu.matmul %26, %25, %cst_10 {dimension_numbers = #tpu.dot_dimension_numbers<[1], [0], [0], [1], [0, 0, 1, 1], [], []>} : vector<128x64xf32>, vector<64x200xf32>, vector<128x200xf32> -> vector<128x200xf32>
    %cst_11 = arith.constant 0.000000e+00 : f32
    %28 = vector.broadcast %cst_11 : f32 to vector<128x200xf32>
    %29 = arith.maximumf %27, %28 : vector<128x200xf32>
    %c0_12 = arith.constant 0 : index
    %c0_13 = arith.constant 0 : index
    %c0_14 = arith.constant 0 : index
    %30 = vector.load %arg7[%c0_12, %c0_13, %c0_14] : memref<1x128x200xf32, #tpu.memory_space<vmem>>, vector<1x128x200xf32>
    %31 = vector.shape_cast %30 : vector<1x128x200xf32> to vector<128x200xf32>
    %32 = vector.shape_cast %29 : vector<128x200xf32> to vector<1x128x200xf32>
    tpu.vector_store %arg7[%c0_12, %c0_13, %c0_14], %32 {strides = array<i32>} : memref<1x128x200xf32, #tpu.memory_space<vmem>>, vector<1x128x200xf32>,
    return
  }
  func.func @transform_0(%arg0: i32, %arg1: i32) -> (i32, i32, i32) {
    %c0_i32 = arith.constant 0 : i32
    %c0_i32_0 = arith.constant 0 : i32
    return %arg1, %c0_i32, %arg0 : i32, i32, i32
  }
  func.func @transform_1(%arg0: i32, %arg1: i32) -> (i32, i32) {
    %c0_i32 = arith.constant 0 : i32
    %c0_i32_0 = arith.constant 0 : i32
    return %c0_i32, %arg0 : i32, i32
  }
  func.func @transform_2(%arg0: i32, %arg1: i32) -> (i32, i32) {
    %c0_i32 = arith.constant 0 : i32
    %c0_i32_0 = arith.constant 0 : i32
    return %c0_i32, %arg0 : i32, i32
  }
  func.func @transform_3(%arg0: i32, %arg1: i32) -> (i32, i32) {
    %c0_i32 = arith.constant 0 : i32
    %c0_i32_0 = arith.constant 0 : i32
    %c0_i32_1 = arith.constant 0 : i32
    return %c0_i32, %c0_i32_0 : i32, i32
  }
  func.func @transform_4(%arg0: i32, %arg1: i32) -> (i32, i32) {
    %c0_i32 = arith.constant 0 : i32
    %c0_i32_0 = arith.constant 0 : i32
    %c0_i32_1 = arith.constant 0 : i32
    return %c0_i32, %c0_i32_0 : i32, i32
  }
  func.func @transform_5(%arg0: i32, %arg1: i32) -> (i32, i32, i32) {
    %c0_i32 = arith.constant 0 : i32
    %c0_i32_0 = arith.constant 0 : i32
    return %arg1, %c0_i32, %arg0 : i32, i32, i32
  }
}

</mosaic_0001>

<bundles_post_ra>
// kernel: _forward.1
= control target key start
LH: loop header
LB: loop body
LE: loop exit
PB: predicated region body
PF: predicated region fallthrough
CT: control target
= control target key end

     0   :  { %s1138_s18 = smov 0   ;;  %s1140_s19 = smov 0   ;;  %s1407_s0 = inlined_call_operand.vmem [shape: f32[2,3,200], index: 0, kind: input, shape index: {}]   ;;  %s1408_s1 = inlined_call_operand.vmem [shape: f32[3,200], index: 1, kind: input, shape index: {}]   ;;  %s1409_s2 = inlined_call_operand.vmem [shape: f32[3,200], index: 2, kind: input, shape index: {}]   ;;  %s1410_s3 = inlined_call_operand.vmem [shape: f32[64,3], index: 3, kind: input, shape index: {}]   ;;  %s1411_s4 = inlined_call_operand.vmem [shape: f32[128,64], index: 4, kind: input, shape index: {}]   ;;  %s1412_s5 = inlined_call_operand.vmem [shape: f32[2,128,200], index: 5, kind: output, shape index: {}]  }
   0x1   :  { %s1142_s20 = smov 0  }
   0x2 LB: > { %s24_s21 = sadd.s32 1, %s1098_s19  ;;  %p990_p0 = scmp.ge.s32.totalorder %s1102_s20, 1  ;;  %s1102_s20 = sphi %s1142_s20, %s15_s20   ;;  %s1098_s19 = sphi %s1140_s19, %s1414_s19   ;;  %s1094_s18 = sphi %s1138_s18, %s1413_s18  }
   0x3   : > { %p25_p1 = scmp.ge.s32.totalorder %s24_s21, 2  ;;  %p230_p2 = scmp.lt.s32.totalorder %s1102_s20, 3 }
   0x5   : > { %s1416_s21 = smov (%p25_p1, %s24_s21), 0  ;;  %p231_p3 = pnand %p990_p0, %p230_p2 }
   0x6   : > { %v313_v0 = vld [vmem:[%s1410_s3] sm:$0xff] (!%p231_p3)  ;;  %v1104_v1 = vmov (!%p231_p3), 1   ;;  %v1105_v2 = vmov (!%p231_p3), 0   ;;  %v314_v3 = vld [vmem:[%s1410_s3 + $0x8] sm:$0xff] (!%p231_p3)  ;;  %v316_v4 = vld [vmem:[%s1410_s3 + $0x18] sm:$0xff] (!%p231_p3)  ;;  %v1106_v5 = vmov (!%p231_p3), 2   ;;  %v362_v12 = vlaneseq (!%p231_p3) }
   0x7   : > { %234 = sbr.rel (%p231_p3) target bundleno = 458 (0x1ca), region = 40  ;;  %1068 = vset.pattern.permute.xlu1 (!%p231_p3), %v1104_v1  ;;  %1067 = vset.pattern.permute.xlu0 (!%p231_p3), %v1105_v2  ;;  %v318_v6 = vld [vmem:[%s1410_s3 + $0x28] sm:$0xff] (!%p231_p3)  ;;  %v315_v7 = vld [vmem:[%s1410_s3 + $0x10] sm:$0xff] (!%p231_p3)  ;;  %v320_v8 = vld [vmem:[%s1410_s3 + $0x38] sm:$0xff] (!%p231_p3)  ;;  %v1107_v11 = vmov (!%p231_p3), 0.0   ;;  %p277_p4 = scmp.lt.s32.totalorder (!%p231_p3), %s1094_s18, 1 }
   0x8   : > { %397 = vperm.xlu1 (!%p231_p3), %1068, %v313_v0   ;;  %323 = vperm.xlu0 (!%p231_p3), %1067, %v313_v0   ;;  %v317_v9 = vld [vmem:[%s1410_s3 + $0x20] sm:$0xff] (!%p231_p3)  ;;  %v319_v10 = vld [vmem:[%s1410_s3 + $0x30] sm:$0xff] (!%p231_p3)  ;;  %v363_v15 = vshrl.u32 (!%p231_p3), %v362_v12, 7  ;;  %vm592_vm0 = vcmask (!%p231_p3), 523264   ;;  %vm835_vm1 = vcmask (!%p231_p3), 588800  }
   0x9   : > { %705 = vmatprep.mubr.f32.mxu0 (!%p231_p3), %v1107_v11  ;;  %753 = vmatprep.mubr.f32.mxu1 (!%p231_p3), %v1107_v11  ;;  %v309_v14 = vld [vmem:[%s1408_s1] sm:$0x77] (!%p231_p3) }
   0xa   : > { %v311_v19 = vld [vmem:[%s1409_s2] sm:$0x77] (!%p231_p3)  ;;  %v430_v20 = vsub.s32 (!%p231_p3), 1, %v363_v15  ;;  %v434_v21 = vsub.s32 (!%p231_p3), 5, %v363_v15  ;;  %v364_v23 = vsub.s32 (!%p231_p3), 0, %v363_v15  ;;  %v368_v24 = vsub.s32 (!%p231_p3), 4, %v363_v15 }
   0xb   : > { %v512_v27 = vsub.s32 (!%p231_p3), 2, %v363_v15  ;;  %v516_v28 = vsub.s32 (!%p231_p3), 6, %v363_v15 }
   0xc   : > { %401 = vperm.xlu1 (!%p231_p3), %1068, %v314_v3   ;;  %328 = vperm.xlu0 (!%p231_p3), %1067, %v314_v3  }
   0xe   : > { %s1418_s18 = smov (!%p277_p4, %s1094_s18), 1 }
   0xf   : > { %s1013_s13 = sshll.u32 %s1418_s18, 3  ;;  %s1014_s11 = sshll.u32 %s1418_s18, 8 }
  0x10   : > { %1069 = vset.pattern.permute.xlu1 %v1106_v5  ;;  %338 = vperm.xlu0 %1067, %v316_v4   ;;  %s284_s16 = scalar_lea.vmem %s1407_s0, %s1013_s13  ;;  %s1348_s14 = scalar_lea.vmem %s1412_s5, %s1014_s11 }
  0x11   : > { %483 = vperm.xlu1 %1069, %v314_v3   ;;  %v308_v13 = vld [vmem:[%s284_s16] sm:$0x77] }
  0x12   : > { %v310_v17 = vmul.f32 %v309_v14, %v308_v13 }
  0x14   : > { %348 = vperm.xlu0 %1067, %v318_v6   ;;  %v312_v22 = vadd.f32 %v311_v19, %v310_v17 }
  0x15   : > { %1070 = vset.pattern.permute.xlu1 %v1105_v2 }
  0x16   : > { %333 = vperm.xlu1 %1070, %v315_v7   ;;  %v431_v29 = vrot.slane %v312_v22, %v430_v20  ;;  %v435_v30 = vrot.slane %v312_v22, %v434_v21  ;;  %v365_v31 = vrot.slane %v312_v22, %v364_v23  ;;  %v369_v32 = vrot.slane %v312_v22, %v368_v24 }
  0x17   : > { %v513_v35 = vrot.slane %v312_v22, %v512_v27  ;;  %v517_v36 = vrot.slane %v312_v22, %v516_v28 }
  0x18   : > { %358 = vperm.xlu0 %1067, %v320_v8   ;;  %v1198_v37 = vrot.slane %v431_v29, %v430_v20  ;;  %v1200_v38 = vrot.slane %v435_v30, %v430_v20  ;;  %v1202_v39 = vrot.slane %v365_v31, %v364_v23  ;;  %v1204_v40 = vrot.slane %v369_v32, %v364_v23 }
  0x19   : > { %v1208_v43 = vrot.slane %v513_v35, %v512_v27  ;;  %v1210_v44 = vrot.slane %v517_v36, %v512_v27 }
  0x1a   : > { %1071 = vset.pattern.permute.xlu1 %v1104_v1 }
  0x1b   : > { %405 = vperm.xlu1 %1071, %v315_v7  }
  0x1c   : > { %1077 = vset.pattern.permute.xlu0 %v1106_v5 }
  0x1d   : > { %479 = vperm.xlu0 %1077, %v313_v0  }
  0x1f   : > { %409 = vperm.xlu1 %1071, %v316_v4  }
  0x21   : > { %487 = vperm.xlu0 %1077, %v315_v7  }
  0x23   : > { %1072 = vset.pattern.permute.xlu1 %v1106_v5 }
  0x24   : > { %491 = vperm.xlu1 %1072, %v316_v4  }
  0x25   : > { %495 = vperm.xlu0 %1077, %v317_v9  }
  0x28   : > { %1073 = vset.pattern.permute.xlu1 %v1105_v2 }
  0x29   : > { %343 = vperm.xlu1 %1073, %v317_v9   ;;  %503 = vperm.xlu0 %1077, %v319_v10  }
  0x2d   : > { %1074 = vset.pattern.permute.xlu1 %v1104_v1 }
  0x2e   : > { %413 = vperm.xlu1 %1074, %v317_v9  }
  0x32   : > { %417 = vperm.xlu1 %1074, %v318_v6  }
  0x36   : > { %1075 = vset.pattern.permute.xlu1 %v1106_v5 }
  0x37   : > { %499 = vperm.xlu1 %1075, %v318_v6  }
  0x3b   : > { %1076 = vset.pattern.permute.xlu1 %v1105_v2 }
  0x3c   : > { %353 = vperm.xlu1 %1076, %v319_v10  }
  0x40   : > { %1078 = vset.pattern.permute.xlu1 %v1104_v1 }
  0x41   : > { %421 = vperm.xlu1 %1078, %v319_v10  }
  0x45   : > { %425 = vperm.xlu1 %1078, %v320_v8  }
  0x49   : > { %1079 = vset.pattern.permute.xlu1 %v1106_v5 }
  0x4a   : > { %507 = vperm.xlu1 %1079, %v320_v8  }
  0x87   : > { %v398_v16 = vpop.permute.xlu1 %397  ;;  %v324_v18 = vpop.permute.xlu0 %323 }
  0x88   : > { %v446_v45 = vmul.f32 %v1198_v37, %v398_v16  ;;  %v447_v46 = vmul.f32 %v1200_v38, %v398_v16  ;;  %v380_v47 = vmul.f32 %v1202_v39, %v324_v18  ;;  %v381_v48 = vmul.f32 %v1204_v40, %v324_v18 }
  0x8a   : > { %v462_v57 = vadd.f32 %v446_v45, %v380_v47  ;;  %v463_v58 = vadd.f32 %v447_v46, %v381_v48 }
  0x8b   : > { %v402_v25 = vpop.permute.xlu1 %401  ;;  %v329_v26 = vpop.permute.xlu0 %328 }
  0x8c   : > { %v448_v50 = vmul.f32 %v1198_v37, %v402_v25  ;;  %v449_v51 = vmul.f32 %v1200_v38, %v402_v25  ;;  %v382_v52 = vmul.f32 %v1202_v39, %v329_v26  ;;  %v383_v53 = vmul.f32 %v1204_v40, %v329_v26 }
  0x8e   : > { %v464_v59 = vadd.f32 %v448_v50, %v382_v52  ;;  %v465_v60 = vadd.f32 %v449_v51, %v383_v53 }
  0x8f   : > { %v339_v33 = vpop.permute.xlu0 %338 }
  0x90   : > { %v484_v34 = vpop.permute.xlu1 %483  ;;  %v386_v61 = vmul.f32 %v1202_v39, %v339_v33  ;;  %v387_v62 = vmul.f32 %v1204_v40, %v339_v33 }
  0x91   : > { %v530_v54 = vmul.f32 %v1208_v43, %v484_v34  ;;  %v531_v55 = vmul.f32 %v1210_v44, %v484_v34 }
  0x93   : > { %v1206_v41 = vpop.permute.xlu0 %348  ;;  %v546_v4 = vadd.f32 %v530_v54, %v464_v59  ;;  %v547_v5 = vadd.f32 %v531_v55, %v465_v60 }
  0x95   : > { %v334_v42 = vpop.permute.xlu1 %333  ;;  %v563_v20 = vmax.f32 %v547_v5, 0.0  ;;  %v562_v22 = vmax.f32 %v546_v4, 0.0 }
  0x96   : > { %v384_v6 = vmul.f32 %v1202_v39, %v334_v42  ;;  %v385_v7 = vmul.f32 %v1204_v40, %v334_v42 }
  0x97   : > { %v1216_v49 = vpop.permute.xlu0 %358 }
  0x9a   : > { %v406_v56 = vpop.permute.xlu1 %405 }
  0x9b   : > { %v450_v0 = vmul.f32 %v1198_v37, %v406_v56  ;;  %v451_v1 = vmul.f32 %v1200_v38, %v406_v56 }
  0x9c   : > { %v480_v63 = vpop.permute.xlu0 %479 }
  0x9d   : > { %v528_v2 = vmul.f32 %v1208_v43, %v480_v63  ;;  %v529_v3 = vmul.f32 %v1210_v44, %v480_v63  ;;  %v466_v15 = vadd.f32 %v450_v0, %v384_v6  ;;  %v467_v16 = vadd.f32 %v451_v1, %v385_v7 }
  0x9e   : > { %v410_v8 = vpop.permute.xlu1 %409  ;;  %v391_v63 = vmul.f32 %v1204_v40, %v1206_v41 }
  0x9f   : > { %v544_v9 = vadd.f32 %v528_v2, %v462_v57  ;;  %v545_v10 = vadd.f32 %v529_v3, %v463_v58  ;;  %v452_v12 = vmul.f32 %v1198_v37, %v410_v8  ;;  %v453_v13 = vmul.f32 %v1200_v38, %v410_v8 }
  0xa0   : > { %v488_v14 = vpop.permute.xlu0 %487 }
  0xa1   : > { %v532_v17 = vmul.f32 %v1208_v43, %v488_v14  ;;  %v533_v18 = vmul.f32 %v1210_v44, %v488_v14  ;;  %v561_v19 = vmax.f32 %v545_v10, 0.0  ;;  %v560_v21 = vmax.f32 %v544_v9, 0.0 }
  0xa2   : > { %v468_v23 = vadd.f32 %v452_v12, %v386_v61  ;;  %v469_v24 = vadd.f32 %v453_v13, %v387_v62  ;;  %v390_v62 = vmul.f32 %v1202_v39, %v1206_v41 }
  0xa3   : > { %v548_v25 = vadd.f32 %v532_v17, %v466_v15  ;;  %v549_v26 = vadd.f32 %v533_v18, %v467_v16  ;;  %v492_v27 = vpop.permute.xlu1 %491  ;;  %v1015_v30 = vpack.c.bf16 %v563_v20, %v561_v19  ;;  %v1017_v31 = vpack.c.bf16 %v562_v22, %v560_v21 }
  0xa4   : > { %v534_v28 = vmul.f32 %v1208_v43, %v492_v27  ;;  %v535_v29 = vmul.f32 %v1210_v44, %v492_v27  ;;  %v496_v52 = vpop.permute.xlu0 %495 }
  0xa5   : > { %1016 = vmatprep.subr.bf16.mxu0 %v1015_v30  ;;  %1031 = vmatprep.subr.bf16.mxu1 %v1015_v30  ;;  %v564_v34 = vmax.f32 %v548_v25, 0.0  ;;  %v565_v35 = vmax.f32 %v549_v26, 0.0  ;;  %v536_v58 = vmul.f32 %v1208_v43, %v496_v52  ;;  %v537_v59 = vmul.f32 %v1210_v44, %v496_v52  ;;  %v586_v52 = vld [vmem:[%s1411_s4 + $0x50] sm:$0xff] }
  0xa6   : > { %v550_v32 = vadd.f32 %v534_v28, %v468_v23  ;;  %v551_v33 = vadd.f32 %v535_v29, %v469_v24  ;;  %1018 = vmatpush1.bf16.msra.mxu0 %v1017_v31  ;;  %1035 = vmatpush1.bf16.msra.mxu1 %v1017_v31  ;;  %v394_v29 = vmul.f32 %v1202_v39, %v1216_v49 }
  0xa7   : > { %v395_v30 = vmul.f32 %v1204_v40, %v1216_v49  ;;  %v585_v49 = vld [vmem:[%s1411_s4 + $0x48] sm:$0xff] }
  0xa8   : > { %v566_v36 = vmax.f32 %v550_v32, 0.0  ;;  %v567_v42 = vmax.f32 %v551_v33, 0.0  ;;  %v344_v45 = vpop.permute.xlu1 %343  ;;  %v504_v21 = vpop.permute.xlu0 %503 }
  0xa9   : > { %v388_v53 = vmul.f32 %v1202_v39, %v344_v45  ;;  %v389_v54 = vmul.f32 %v1204_v40, %v344_v45  ;;  %v540_v27 = vmul.f32 %v1208_v43, %v504_v21  ;;  %v541_v28 = vmul.f32 %v1210_v44, %v504_v21 }
  0xaa   : > { %v1019_v46 = vpack.c.bf16 %v567_v42, %v565_v35  ;;  %v1021_v47 = vpack.c.bf16 %v566_v36, %v564_v34 }
  0xac   : > { %1020 = vmatprep.subr.bf16.mxu0 %v1019_v46  ;;  %1032 = vmatprep.subr.bf16.mxu1 %v1019_v46 }
  0xad   : > { %v414_v48 = vpop.permute.xlu1 %413  ;;  %1022 = vmatpush1.bf16.msra.mxu0 %v1021_v47  ;;  %1036 = vmatpush1.bf16.msra.mxu1 %v1021_v47 }
  0xae   : > { %v454_v50 = vmul.f32 %v1198_v37, %v414_v48  ;;  %v455_v51 = vmul.f32 %v1200_v38, %v414_v48 }
  0xb0   : > { %v470_v56 = vadd.f32 %v454_v50, %v388_v53  ;;  %v471_v57 = vadd.f32 %v455_v51, %v389_v54  ;;  %v578_v51 = vld [vmem:[%s1411_s4 + $0x10] sm:$0xff]  ;;  %v579_v53 = vld [vmem:[%s1411_s4 + $0x18] sm:$0xff] }
  0xb1   : > { %v418_v55 = vpop.permute.xlu1 %417  ;;  %v587_v54 = vld [vmem:[%s1411_s4 + $0x58] sm:$0xff] }
  0xb2   : > { %v456_v60 = vmul.f32 %v1198_v37, %v418_v55  ;;  %v457_v61 = vmul.f32 %v1200_v38, %v418_v55  ;;  %v552_v0 = vadd.f32 %v536_v58, %v470_v56  ;;  %v553_v1 = vadd.f32 %v537_v59, %v471_v57  ;;  %v580_v55 = vld [vmem:[%s1411_s4 + $0x20] sm:$0xff]  ;;  %v581_v57 = vld [vmem:[%s1411_s4 + $0x28] sm:$0xff]  ;;  %v582_v59 = vld [vmem:[%s1411_s4 + $0x30] sm:$0xff] }
  0xb3   : > { %v588_v56 = vld [vmem:[%s1411_s4 + $0x60] sm:$0xff]  ;;  %v589_v58 = vld [vmem:[%s1411_s4 + $0x68] sm:$0xff] }
  0xb4   : > { %v472_v3 = vadd.f32 %v456_v60, %v390_v62  ;;  %v473_v4 = vadd.f32 %v457_v61, %v391_v63  ;;  %v568_v9 = vmax.f32 %v552_v0, 0.0  ;;  %v569_v10 = vmax.f32 %v553_v1, 0.0  ;;  %v590_v60 = vld [vmem:[%s1411_s4 + $0x70] sm:$0xff]  ;;  %v583_v61 = vld [vmem:[%s1411_s4 + $0x38] sm:$0xff] }
  0xb5   : > { %v591_v62 = vld [vmem:[%s1411_s4 + $0x78] sm:$0xff] }
  0xb6   : > { %v500_v2 = vpop.permute.xlu1 %499 }
  0xb7   : > { %v538_v5 = vmul.f32 %v1208_v43, %v500_v2  ;;  %v539_v6 = vmul.f32 %v1210_v44, %v500_v2 }
  0xb9   : > { %v554_v7 = vadd.f32 %v538_v5, %v472_v3  ;;  %v555_v8 = vadd.f32 %v539_v6, %v473_v4 }
  0xbb   : > { %v570_v12 = vmax.f32 %v554_v7, 0.0  ;;  %v571_v13 = vmax.f32 %v555_v8, 0.0  ;;  %v354_v14 = vpop.permute.xlu1 %353 }
  0xbc   : > { %v392_v19 = vmul.f32 %v1202_v39, %v354_v14  ;;  %v393_v20 = vmul.f32 %v1204_v40, %v354_v14  ;;  %v576_v40 = vld [vmem:[%s1411_s4] sm:$0xff] }
  0xbd   : > { %v1023_v15 = vpack.c.bf16 %v571_v13, %v569_v10  ;;  %v1025_v16 = vpack.c.bf16 %v570_v12, %v568_v9 }
  0xbf   : > { %1024 = vmatprep.subr.bf16.mxu0 %v1023_v15  ;;  %1033 = vmatprep.subr.bf16.mxu1 %v1023_v15 }
  0xc0   : > { %v422_v41 = vpop.permute.xlu1 %421  ;;  %1026 = vmatpush1.bf16.msra.mxu0 %v1025_v16  ;;  %1037 = vmatpush1.bf16.msra.mxu1 %v1025_v16 }
  0xc1   : > { %v458_v17 = vmul.f32 %v1198_v37, %v422_v41  ;;  %v459_v18 = vmul.f32 %v1200_v38, %v422_v41 }
  0xc3   : > { %v474_v23 = vadd.f32 %v458_v17, %v392_v19  ;;  %v475_v24 = vadd.f32 %v459_v18, %v393_v20 }
  0xc4   : > { %v426_v22 = vpop.permute.xlu1 %425 }
  0xc5   : > { %v460_v25 = vmul.f32 %v1198_v37, %v426_v22  ;;  %v461_v26 = vmul.f32 %v1200_v38, %v426_v22  ;;  %v556_v31 = vadd.f32 %v540_v27, %v474_v23  ;;  %v557_v32 = vadd.f32 %v541_v28, %v475_v24 }
  0xc7   : > { %v476_v34 = vadd.f32 %v460_v25, %v394_v29  ;;  %v477_v35 = vadd.f32 %v461_v26, %v395_v30  ;;  %v573_v47 = vmax.f32 %v557_v32, 0.0  ;;  %v572_v48 = vmax.f32 %v556_v31, 0.0 }
  0xc9   : > { %v508_v33 = vpop.permute.xlu1 %507 }
  0xca   : > { %v542_v36 = vmul.f32 %v1208_v43, %v508_v33  ;;  %v543_v37 = vmul.f32 %v1210_v44, %v508_v33  ;;  %v584_v43 = vld [vmem:[%s1411_s4 + $0x40] sm:$0xff]  ;;  %v577_v44 = vld [vmem:[%s1411_s4 + $0x8] sm:$0xff] }
  0xcc   : > { %v558_v38 = vadd.f32 %v542_v36, %v476_v34  ;;  %v559_v42 = vadd.f32 %v543_v37, %v477_v35 }
  0xce   : > { %v574_v45 = vmax.f32 %v558_v38, 0.0  ;;  %v575_v46 = vmax.f32 %v559_v42, 0.0 }
  0xd0   : > { %v1027_v50 = vpack.c.bf16 %v575_v46, %v573_v47  ;;  %v1029_v39 = vpack.c.bf16 %v574_v45, %v572_v48 }
  0xd2   : > { %1028 = vmatprep.subr.bf16.mxu0 %v1027_v50  ;;  %1034 = vmatprep.subr.bf16.mxu1 %v1027_v50 }
  0xd3   : > { %1030 = vmatpush1.bf16.msra.mxu0 %v1029_v39  ;;  %1038 = vmatpush1.bf16.msra.mxu1 %v1029_v39 }
  0xd6   : > { %995 = vmatmul.mubr.msk.f32.vlgmr.msra.gmra.mrb[0].mxu0 %vm592_vm0, %v576_v40  ;;  %1003 = vmatmul.mubr.msk.f32.vlgmr.msra.gmra.mrb[0].mxu1 %vm592_vm0, %v584_v43 }
  0xd7   : > { %711 = vmatprep.mubr.f32.mxu0 %v1107_v11  ;;  %759 = vmatprep.mubr.f32.mxu1 %v1107_v11 }
  0xda   : > { %996 = vmatmul.mubr.msk.f32.gmra.mrb[2].mxu0 %vm592_vm0, %v577_v44  ;;  %1004 = vmatmul.mubr.msk.f32.gmra.mrb[2].mxu1 %vm592_vm0, %v585_v49 }
  0xdb   : > { %717 = vmatprep.mubr.f32.mxu0 %v1107_v11  ;;  %765 = vmatprep.mubr.f32.mxu1 %v1107_v11 }
  0xde   : > { %997 = vmatmul.mubr.msk.f32.gmra.mrb[4].mxu0 %vm592_vm0, %v578_v51  ;;  %1005 = vmatmul.mubr.msk.f32.gmra.mrb[4].mxu1 %vm592_vm0, %v586_v52 }
  0xdf   : > { %723 = vmatprep.mubr.f32.mxu0 %v1107_v11  ;;  %771 = vmatprep.mubr.f32.mxu1 %v1107_v11 }
  0xe2   : > { %998 = vmatmul.mubr.msk.f32.gmra.mrb[6].mxu0 %vm592_vm0, %v579_v53  ;;  %1006 = vmatmul.mubr.msk.f32.gmra.mrb[6].mxu1 %vm592_vm0, %v587_v54 }
  0xe3   : > { %729 = vmatprep.mubr.f32.mxu0 %v1107_v11  ;;  %777 = vmatprep.mubr.f32.mxu1 %v1107_v11 }
  0xe6   : > { %999 = vmatmul.mubr.msk.f32.gmra.mrb[8].mxu0 %vm592_vm0, %v580_v55  ;;  %1007 = vmatmul.mubr.msk.f32.gmra.mrb[8].mxu1 %vm592_vm0, %v588_v56 }
  0xe7   : > { %735 = vmatprep.mubr.f32.mxu0 %v1107_v11  ;;  %783 = vmatprep.mubr.f32.mxu1 %v1107_v11 }
  0xea   : > { %1000 = vmatmul.mubr.msk.f32.gmra.mrb[10].mxu0 %vm592_vm0, %v581_v57  ;;  %1008 = vmatmul.mubr.msk.f32.gmra.mrb[10].mxu1 %vm592_vm0, %v589_v58 }
  0xeb   : > { %741 = vmatprep.mubr.f32.mxu0 %v1107_v11  ;;  %789 = vmatprep.mubr.f32.mxu1 %v1107_v11 }
  0xee   : > { %1001 = vmatmul.mubr.msk.f32.gmra.mrb[12].mxu0 %vm592_vm0, %v582_v59  ;;  %1009 = vmatmul.mubr.msk.f32.gmra.mrb[12].mxu1 %vm592_vm0, %v590_v60 }
  0xef   : > { %747 = vmatprep.mubr.f32.mxu0 %v1107_v11  ;;  %795 = vmatprep.mubr.f32.mxu1 %v1107_v11 }
  0xf2   : > { %1002 = vmatmul.mubr.msk.f32.gmra.mrb[14].mxu0 %vm592_vm0, %v583_v61  ;;  %1010 = vmatmul.mubr.msk.f32.gmra.mrb[14].mxu1 %vm592_vm0, %v591_v62 }
 0x1a9   : > { %v707_v11 = vpop.f32.mrb[0].mxu0  ;;  %v755_v63 = vpop.f32.mrb[0].mxu1 }
 0x1aa   : > { %v802_v0 = vmax.f32 %v707_v11, 0.0  ;;  %v818_v1 = vmax.f32 %v755_v63, 0.0  ;;  %v709_v2 = vpop.f32.mrb[1].mxu0  ;;  %v757_v3 = vpop.f32.mrb[1].mxu1 }
 0x1ab   : > { %v803_v4 = vmax.f32 %v709_v2, 0.0  ;;  %v819_v5 = vmax.f32 %v757_v3, 0.0 }
 0x1ac   : > { %834 = vst [vmem:[%s1348_s14] sm:$0xff] %v802_v0  ;;  %851 = vst [vmem:[%s1348_s14 + $0x80] sm:$0xff] %v818_v1 }
 0x1ad   : > { %836 = vst.msk [vmem:[%s1348_s14 + $0x8] sm:$0xff] %vm835_vm1, %v803_v4  ;;  %852 = vst.msk [vmem:[%s1348_s14 + $0x88] sm:$0xff] %vm835_vm1, %v819_v5  ;;  %v713_v6 = vpop.f32.mrb[2].mxu0  ;;  %v761_v7 = vpop.f32.mrb[2].mxu1 }
 0x1ae   : > { %v804_v8 = vmax.f32 %v713_v6, 0.0  ;;  %v820_v9 = vmax.f32 %v761_v7, 0.0  ;;  %v715_v10 = vpop.f32.mrb[3].mxu0  ;;  %v763_v12 = vpop.f32.mrb[3].mxu1 }
 0x1af   : > { %v805_v13 = vmax.f32 %v715_v10, 0.0  ;;  %v821_v14 = vmax.f32 %v763_v12, 0.0 }
 0x1b0   : > { %837 = vst [vmem:[%s1348_s14 + $0x10] sm:$0xff] %v804_v8  ;;  %853 = vst [vmem:[%s1348_s14 + $0x90] sm:$0xff] %v820_v9 }
 0x1b1   : > { %838 = vst.msk [vmem:[%s1348_s14 + $0x18] sm:$0xff] %vm835_vm1, %v805_v13  ;;  %854 = vst.msk [vmem:[%s1348_s14 + $0x98] sm:$0xff] %vm835_vm1, %v821_v14  ;;  %v719_v15 = vpop.f32.mrb[4].mxu0  ;;  %v767_v16 = vpop.f32.mrb[4].mxu1 }
 0x1b2   : > { %v806_v41 = vmax.f32 %v719_v15, 0.0  ;;  %v822_v17 = vmax.f32 %v767_v16, 0.0  ;;  %v721_v18 = vpop.f32.mrb[5].mxu0  ;;  %v769_v19 = vpop.f32.mrb[5].mxu1 }
 0x1b3   : > { %v807_v20 = vmax.f32 %v721_v18, 0.0  ;;  %v823_v21 = vmax.f32 %v769_v19, 0.0 }
 0x1b4   : > { %839 = vst [vmem:[%s1348_s14 + $0x20] sm:$0xff] %v806_v41  ;;  %855 = vst [vmem:[%s1348_s14 + $0xa0] sm:$0xff] %v822_v17 }
 0x1b5   : > { %840 = vst.msk [vmem:[%s1348_s14 + $0x28] sm:$0xff] %vm835_vm1, %v807_v20  ;;  %856 = vst.msk [vmem:[%s1348_s14 + $0xa8] sm:$0xff] %vm835_vm1, %v823_v21  ;;  %v725_v22 = vpop.f32.mrb[6].mxu0  ;;  %v773_v23 = vpop.f32.mrb[6].mxu1 }
 0x1b6   : > { %v808_v24 = vmax.f32 %v725_v22, 0.0  ;;  %v824_v25 = vmax.f32 %v773_v23, 0.0  ;;  %v727_v26 = vpop.f32.mrb[7].mxu0  ;;  %v775_v27 = vpop.f32.mrb[7].mxu1 }
 0x1b7   : > { %v809_v28 = vmax.f32 %v727_v26, 0.0  ;;  %v825_v29 = vmax.f32 %v775_v27, 0.0 }
 0x1b8   : > { %841 = vst [vmem:[%s1348_s14 + $0x30] sm:$0xff] %v808_v24  ;;  %857 = vst [vmem:[%s1348_s14 + $0xb0] sm:$0xff] %v824_v25 }
 0x1b9   : > { %842 = vst.msk [vmem:[%s1348_s14 + $0x38] sm:$0xff] %vm835_vm1, %v809_v28  ;;  %858 = vst.msk [vmem:[%s1348_s14 + $0xb8] sm:$0xff] %vm835_vm1, %v825_v29  ;;  %v731_v30 = vpop.f32.mrb[8].mxu0  ;;  %v779_v31 = vpop.f32.mrb[8].mxu1 }
 0x1ba   : > { %v810_v32 = vmax.f32 %v731_v30, 0.0  ;;  %v826_v33 = vmax.f32 %v779_v31, 0.0  ;;  %v733_v34 = vpop.f32.mrb[9].mxu0  ;;  %v781_v35 = vpop.f32.mrb[9].mxu1 }
 0x1bb   : > { %v811_v36 = vmax.f32 %v733_v34, 0.0  ;;  %v827_v37 = vmax.f32 %v781_v35, 0.0 }
 0x1bc   : > { %843 = vst [vmem:[%s1348_s14 + $0x40] sm:$0xff] %v810_v32  ;;  %859 = vst [vmem:[%s1348_s14 + $0xc0] sm:$0xff] %v826_v33 }
 0x1bd   : > { %844 = vst.msk [vmem:[%s1348_s14 + $0x48] sm:$0xff] %vm835_vm1, %v811_v36  ;;  %860 = vst.msk [vmem:[%s1348_s14 + $0xc8] sm:$0xff] %vm835_vm1, %v827_v37  ;;  %v737_v38 = vpop.f32.mrb[10].mxu0  ;;  %v785_v42 = vpop.f32.mrb[10].mxu1 }
 0x1be   : > { %v812_v45 = vmax.f32 %v737_v38, 0.0  ;;  %v828_v46 = vmax.f32 %v785_v42, 0.0  ;;  %v739_v47 = vpop.f32.mrb[11].mxu0  ;;  %v787_v48 = vpop.f32.mrb[11].mxu1 }
 0x1bf   : > { %v813_v50 = vmax.f32 %v739_v47, 0.0  ;;  %v829_v39 = vmax.f32 %v787_v48, 0.0 }
 0x1c0   : > { %845 = vst [vmem:[%s1348_s14 + $0x50] sm:$0xff] %v812_v45  ;;  %861 = vst [vmem:[%s1348_s14 + $0xd0] sm:$0xff] %v828_v46 }
 0x1c1   : > { %846 = vst.msk [vmem:[%s1348_s14 + $0x58] sm:$0xff] %vm835_vm1, %v813_v50  ;;  %862 = vst.msk [vmem:[%s1348_s14 + $0xd8] sm:$0xff] %vm835_vm1, %v829_v39  ;;  %v743_v40 = vpop.f32.mrb[12].mxu0  ;;  %v791_v43 = vpop.f32.mrb[12].mxu1 }
 0x1c2   : > { %v814_v44 = vmax.f32 %v743_v40, 0.0  ;;  %v830_v49 = vmax.f32 %v791_v43, 0.0  ;;  %v745_v51 = vpop.f32.mrb[13].mxu0  ;;  %v793_v52 = vpop.f32.mrb[13].mxu1 }
 0x1c3   : > { %v815_v53 = vmax.f32 %v745_v51, 0.0  ;;  %v831_v54 = vmax.f32 %v793_v52, 0.0 }
 0x1c4   : > { %847 = vst [vmem:[%s1348_s14 + $0x60] sm:$0xff] %v814_v44  ;;  %863 = vst [vmem:[%s1348_s14 + $0xe0] sm:$0xff] %v830_v49 }
 0x1c5   : > { %848 = vst.msk [vmem:[%s1348_s14 + $0x68] sm:$0xff] %vm835_vm1, %v815_v53  ;;  %864 = vst.msk [vmem:[%s1348_s14 + $0xe8] sm:$0xff] %vm835_vm1, %v831_v54  ;;  %v749_v55 = vpop.f32.mrb[14].mxu0  ;;  %v797_v56 = vpop.f32.mrb[14].mxu1 }
 0x1c6   : > { %v816_v57 = vmax.f32 %v749_v55, 0.0  ;;  %v832_v58 = vmax.f32 %v797_v56, 0.0  ;;  %v751_v59 = vpop.f32.mrb[15].mxu0  ;;  %v799_v60 = vpop.f32.mrb[15].mxu1 }
 0x1c7   : > { %v817_v61 = vmax.f32 %v751_v59, 0.0  ;;  %v833_v62 = vmax.f32 %v799_v60, 0.0 }
 0x1c8   : > { %849 = vst [vmem:[%s1348_s14 + $0x70] sm:$0xff] %v816_v57  ;;  %865 = vst [vmem:[%s1348_s14 + $0xf0] sm:$0xff] %v832_v58 }
 0x1c9   : > { %850 = vst.msk [vmem:[%s1348_s14 + $0x78] sm:$0xff] %vm835_vm1, %v817_v61  ;;  %866 = vst.msk [vmem:[%s1348_s14 + $0xf8] sm:$0xff] %vm835_vm1, %v833_v62 }
 0x1ca PF: > { %s15_s20 = sadd.s32 1, %s1102_s20   ;;  %s1413_s18 = smov %s1098_s19 }
 0x1cb   : > { %p12_p5 = scmp.ge.s32.totalorder %s15_s20, 4   ;;  %s1414_s19 = smov %s1416_s21 }
 0x1cd   :  { %14 = sbr.rel (!%p12_p5) target bundleno = 2 (0x2), region = 76 }

</bundles_post_ra>
